<compile_context>
chip_gen: v6e
topology: v6e:2x2x1
jax: 0.10.0
libtpu: 0.0.40
codegen_flags: <defaults>
</compile_context>

<pallas_src>
import math
import numpy as np
import jax
import jax.numpy as jnp
from jax.experimental import pallas as pl
from jax.experimental.pallas import tpu as pltpu

HALF_PI = math.pi / 2.0


def _round_up(x, m):
    return ((x + m - 1) // m) * m


def _cdiv(x, m):
    return (x + m - 1) // m


def _abs_sin_half_pi(x):
    """|sin(pi/2 * x)| elementwise, using only basic VPU ops.

    |sin(pi*x/2)| has period 2 in x and is symmetric about x = 1, so with
    t = x mod 2 and s = 1 - |t - 1|  (s in [0, 1]) we have
    |sin(pi*x/2)| = sin(pi*s/2).  sin on [0, pi/2] is evaluated with a
    degree-9 odd Taylor polynomial (max abs error ~4e-6); the result is >= 0
    by construction so no final abs is needed.  Range reduction loses accuracy
    for |x| >~ 2^23 in f32 (not reachable for network outputs here).
    """
    t = x - 2.0 * jnp.floor(x * 0.5)          # t in [0, 2)
    s = 1.0 - jnp.abs(t - 1.0)                # s in [0, 1]
    theta = s * HALF_PI                       # theta in [0, pi/2]
    th2 = theta * theta
    p = 1.0 + th2 * (-1.0 / 6.0
            + th2 * (1.0 / 120.0
            + th2 * (-1.0 / 5040.0
            + th2 * (1.0 / 362880.0))))
    return theta * p


def make_loss_weights(H, logical):
    """Fuse the constant matrices into one lane-dense slab W = [H | logical^T].

    Only the lane (output) dim is padded to 128; the contraction dim stays at
    its natural size `a` (the MXU pads short K internally; re-padding K would
    only inflate HBM traffic).
    """
    H = jnp.asarray(H, jnp.float32)              # [a, b]
    logical = jnp.asarray(logical, jnp.float32)  # [k, a]
    w = jnp.concatenate([H, logical.T], axis=1)  # [a, b + k]
    n = w.shape[1]
    n_pad = _round_up(n, 128)
    return jnp.pad(w, ((0, 0), (0, n_pad - n)))  # zero cols => |sin(0)| = 0


def loss_forward(pred, y, w_pad, a, *, tile_b=1024):
    """Fused Pallas forward of LossFunc.

    pred, y : [a * batch, 1] (or flat) float32 — PyG-style stacked graphs.
    w_pad   : output of make_loss_weights ([a, n_pad], n_pad multiple of 128).
    a       : number of rows per graph (max(H.size()) in the torch module).
    """
    pred = jnp.asarray(pred, jnp.float32).reshape(-1)
    y = jnp.asarray(y, jnp.float32).reshape(-1)
    batch = pred.shape[0] // a
    a_w, n_pad = w_pad.shape
    assert a_w == a and n_pad % 128 == 0

    # Column-wise re-layout of the torch concat loop == row-major reshape here
    # (the loss is invariant under the transpose, so we work with [batch, a]).
    p2 = pred.reshape(batch, a)
    y2 = y.reshape(batch, a)

    tile_b = max(8, _round_up(tile_b, 8))
    tb = min(tile_b, _round_up(batch, 8))        # multiple of 8 sublanes
    if tb > batch:
        # Corner case (batch < tile and not a multiple of 8): pad <= 7 zero
        # rows so the block's sublane extent fits; zero rows add |sin(0)| = 0.
        y2 = jnp.pad(y2, ((0, tb - batch), (0, 0)))
        p2 = jnp.pad(p2, ((0, tb - batch), (0, 0)))
    rows = y2.shape[0]

    total_tiles = _cdiv(rows, tb)
    # v7x megacore split; on 1-TC chips (v5e/v6e) the size-2 parallel axis is
    # just a serial outer loop and costs at most one fully-masked step.
    num_cores = 2 if total_tiles >= 2 else 1
    inner = _cdiv(total_tiles, num_cores)
    valid = batch                                # real (unpadded) rows

    def kernel(y_ref, p_ref, w_ref, o_ref):
        c = pl.program_id(0)                     # parallel (per-core) axis
        i = pl.program_id(1)                     # reduction axis over tiles

        @pl.when(i == 0)
        def _init():
            o_ref[...] = jnp.zeros_like(o_ref)

        # Row mask for the ragged tail / tiles past the end of this core's
        # share (logical tile index, NOT the clamped one used for the DMA).
        tile_idx = c * inner + i
        rem = valid - tile_idx * tb
        row_ids = jax.lax.broadcasted_iota(jnp.int32, (tb, 1), 0)
        row_mask = row_ids < rem

        s = y_ref[...] + p_ref[...]              # (tb, a)      VPU add
        s = jnp.where(row_mask, s, 0.0)          # zero invalid rows -> 0 loss
        z = jnp.dot(s, w_ref[...],
                    preferred_element_type=jnp.float32)   # (tb, n_pad)  MXU
        v = _abs_sin_half_pi(z)                  # (tb, n_pad)  VPU
        # Fold onto the native (8,128) tiling with pure VALU tree-adds
        # (no per-step XLU reduce, no per-step (1,128) RMW).
        partial = v.reshape(tb // 8, 8, n_pad).sum(axis=0)      # (8, n_pad)
        o_ref[...] += partial.reshape(1, 8, n_pad)

    # Clamp the block index so no DMA window starts fully out of bounds when
    # total_tiles isn't a multiple of num_cores (the row mask already zeroes
    # any such tile's contribution).
    def tile_map(c, i):
        return (jnp.minimum(c * inner + i, total_tiles - 1), 0)

    out = pl.pallas_call(
        kernel,
        out_shape=jax.ShapeDtypeStruct((num_cores, 8, n_pad), jnp.float32),
        grid=(num_cores, inner),
        in_specs=[
            pl.BlockSpec((tb, a), tile_map),               # y tile  (dense, unpadded a)
            pl.BlockSpec((tb, a), tile_map),               # pred tile
            pl.BlockSpec((a, n_pad), lambda c, i: (0, 0)),  # resident fused weights
        ],
        out_specs=pl.BlockSpec((1, 8, n_pad), lambda c, i: (c, 0, 0)),
        compiler_params=pltpu.CompilerParams(
            dimension_semantics=("parallel", "arbitrary"),
        ),
    )(y2, p2, w_pad)

    # Tiny epilogue: sum the per-core (8, n_pad) partial slabs.
    return jnp.sum(out)


def reference_loss(pred, y, H, logical):
    """Pure-JAX literal transcription of LossFunc.forward (true jnp.sin)."""
    H = jnp.asarray(H, jnp.float32)
    logical = jnp.asarray(logical, jnp.float32)
    pred = jnp.asarray(pred, jnp.float32)
    y = jnp.asarray(y, jnp.float32)
    a = max(H.shape)
    tmp = y[0:a]
    res = pred[0:a]
    for i in range(a, y.shape[0], a):
        tmp = jnp.concatenate([tmp, y[i:i + a]], axis=1)
        res = jnp.concatenate([res, pred[i:i + a]], axis=1)
    s = tmp + res
    loss = (jnp.abs(jnp.sin(jnp.matmul(H.T, s) * HALF_PI)).sum()
            + jnp.abs(jnp.sin(jnp.matmul(logical, s) * HALF_PI)).sum())
    return loss


if __name__ == "__main__":
    key = jax.random.PRNGKey(0)

    # Small toric-code-like parity-check setup.  The repo builds H via
    # error_generate.generate_PCM(2*L*L - 2, L) and `logical` via H_Prep; those
    # helpers are external data, so deterministic binary stand-ins with the
    # same structure/shapes are constructed in-script.
    L = 3
    a = 2 * L * L          # 18 qubit nodes   (max(H.size()))
    b = 2 * L * L - 2      # 16 check nodes   (min(H.size()))
    k = 4                  # logical operators

    H_np = np.zeros((a, b), np.float32)
    for j in range(b):
        for q in (j, j + 1, j + L, j + L + 1):   # plaquette-like 4-qubit checks
            H_np[q % a, j] = 1.0
    logical_np = np.zeros((k, a), np.float32)
    logical_np[0, 0::2] = 1.0
    logical_np[1, 1::2] = 1.0
    logical_np[2, :L] = 1.0
    logical_np[3, a - L:] = 1.0

    w_pad = make_loss_weights(H_np, logical_np)

    def run_case(batch, tile_b, case_key):
        ky, kp = jax.random.split(case_key)
        y = jax.random.bernoulli(ky, 0.5, (a * batch, 1)).astype(jnp.float32)   # datas.y
        pred = jax.random.normal(kp, (a * batch, 1), jnp.float32)               # pred
        loss = jax.block_until_ready(loss_forward(pred, y, w_pad, a, tile_b=tile_b))
        ref = reference_loss(pred, y, H_np, logical_np)
        np.testing.assert_allclose(float(loss), float(ref), rtol=1e-3, atol=1e-3)

    keys = jax.random.split(key, 3)
    run_case(batch=48, tile_b=1024, case_key=keys[0])   # single tile, default tiling
    run_case(batch=48, tile_b=8,    case_key=keys[1])   # 6 tiles split over the 2-way parallel axis
    run_case(batch=13, tile_b=8,    case_key=keys[2])   # ragged tail -> in-kernel row mask

    print("KERNEL_OK")
</pallas_src>

<mosaic_0001>
module attributes {stable_mosaic.version = 11 : i64} {
  func.func @kernel(%arg0: i32, %arg1: i32, %arg2: memref<48x18xf32, #tpu.memory_space<vmem>>, %arg3: memref<48x18xf32, #tpu.memory_space<vmem>>, %arg4: memref<18x128xf32, #tpu.memory_space<vmem>>, %arg5: memref<1x8x128xf32, #tpu.memory_space<vmem>>) attributes {dimension_semantics = [#tpu.dimension_semantics<parallel>, #tpu.dimension_semantics<arbitrary>], iteration_bounds = array<i64: 1, 1>, scalar_prefetch = 0 : i64, scratch_operands = 0 : i64, tpu.core_type = #tpu.core_type<tc>, window_params = [{transform_indices = @transform_0, window_bounds = array<i64: 48, 18>}, {transform_indices = @transform_1, window_bounds = array<i64: 48, 18>}, {pipeline_mode = #tpu.pipeline_mode<synchronous>, transform_indices = @transform_2, window_bounds = array<i64: 18, 128>}, {transform_indices = @transform_3, window_bounds = array<i64: 1, 8, 128>}]} {
    %c0_i32 = arith.constant 0 : i32
    %0 = arith.cmpi eq, %arg1, %c0_i32 : i32
    %1 = arith.extui %0 : i1 to i32
    %c0_i32_0 = arith.constant 0 : i32
    %2 = arith.cmpi ne, %1, %c0_i32_0 : i32
    scf.if %2 {
      %cst_25 = arith.constant 0.000000e+00 : f32
      %53 = vector.broadcast %cst_25 : f32 to vector<1x8x128xf32>
      %c0_26 = arith.constant 0 : index
      %c0_27 = arith.constant 0 : index
      %c0_28 = arith.constant 0 : index
      %54 = vector.load %arg5[%c0_26, %c0_27, %c0_28] : memref<1x8x128xf32, #tpu.memory_space<vmem>>, vector<1x8x128xf32>
      tpu.vector_store %arg5[%c0_26, %c0_27, %c0_28], %53 {strides = array<i32>} : memref<1x8x128xf32, #tpu.memory_space<vmem>>, vector<1x8x128xf32>,
    } else {
    }
    %c1_i32 = arith.constant 1 : i32
    %3 = arith.muli %arg0, %c1_i32 : i32
    %4 = arith.addi %3, %arg1 : i32
    %c48_i32 = arith.constant 48 : i32
    %5 = arith.muli %4, %c48_i32 : i32
    %c48_i32_1 = arith.constant 48 : i32
    %6 = arith.subi %c48_i32_1, %5 : i32
    %7 = tpu.iota {dimensions = array<i32: 0>} : vector<48x1xi32>
    %8 = vector.broadcast %6 : i32 to vector<48x1xi32>
    %9 = arith.cmpi slt, %7, %8 : vector<48x1xi32>
    %c0 = arith.constant 0 : index
    %c0_2 = arith.constant 0 : index
    %10 = vector.load %arg2[%c0, %c0_2] : memref<48x18xf32, #tpu.memory_space<vmem>>, vector<48x18xf32>
    %c0_3 = arith.constant 0 : index
    %c0_4 = arith.constant 0 : index
    %11 = vector.load %arg3[%c0_3, %c0_4] : memref<48x18xf32, #tpu.memory_space<vmem>>, vector<48x18xf32>
    %12 = arith.addf %10, %11 : vector<48x18xf32>
    %cst = arith.constant 0.000000e+00 : f32
    %13 = vector.shape_cast %9 : vector<48x1xi1> to vector<48x1xi1>
    %14 = vector.broadcast %13 : vector<48x1xi1> to vector<48x18xi1>
    %15 = vector.broadcast %cst : f32 to vector<48x18xf32>
    %16 = arith.select %14, %12, %15 : vector<48x18xi1>, vector<48x18xf32>
    %c0_5 = arith.constant 0 : index
    %c0_6 = arith.constant 0 : index
    %17 = vector.load %arg4[%c0_5, %c0_6] : memref<18x128xf32, #tpu.memory_space<vmem>>, vector<18x128xf32>
    %cst_7 = arith.constant dense<0.000000e+00> : vector<48x128xf32>
    %18 = tpu.matmul %16, %17, %cst_7 {dimension_numbers = #tpu.dot_dimension_numbers<[1], [0], [0], [1], [0, 0, 1, 1], [], []>} : vector<48x18xf32>, vector<18x128xf32>, vector<48x128xf32> -> vector<48x128xf32>
    %cst_8 = arith.constant 5.000000e-01 : f32
    %19 = vector.broadcast %cst_8 : f32 to vector<48x128xf32>
    %20 = arith.mulf %18, %19 : vector<48x128xf32>
    %21 = math.floor %20 : vector<48x128xf32>
    %cst_9 = arith.constant 2.000000e+00 : f32
    %22 = vector.broadcast %cst_9 : f32 to vector<48x128xf32>
    %23 = arith.mulf %22, %21 : vector<48x128xf32>
    %24 = arith.subf %18, %23 : vector<48x128xf32>
    %cst_10 = arith.constant 1.000000e+00 : f32
    %25 = vector.broadcast %cst_10 : f32 to vector<48x128xf32>
    %26 = arith.subf %24, %25 : vector<48x128xf32>
    %27 = math.absf %26 : vector<48x128xf32>
    %cst_11 = arith.constant 1.000000e+00 : f32
    %28 = vector.broadcast %cst_11 : f32 to vector<48x128xf32>
    %29 = arith.subf %28, %27 : vector<48x128xf32>
    %cst_12 = arith.constant 1.57079637 : f32
    %30 = vector.broadcast %cst_12 : f32 to vector<48x128xf32>
    %31 = arith.mulf %29, %30 : vector<48x128xf32>
    %32 = arith.mulf %31, %31 : vector<48x128xf32>
    %cst_13 = arith.constant 2.75573188E-6 : f32
    %33 = vector.broadcast %cst_13 : f32 to vector<48x128xf32>
    %34 = arith.mulf %32, %33 : vector<48x128xf32>
    %cst_14 = arith.constant -1.98412701E-4 : f32
    %35 = vector.broadcast %cst_14 : f32 to vector<48x128xf32>
    %36 = arith.addf %35, %34 : vector<48x128xf32>
    %37 = arith.mulf %32, %36 : vector<48x128xf32>
    %cst_15 = arith.constant 0.00833333377 : f32
    %38 = vector.broadcast %cst_15 : f32 to vector<48x128xf32>
    %39 = arith.addf %38, %37 : vector<48x128xf32>
    %40 = arith.mulf %32, %39 : vector<48x128xf32>
    %cst_16 = arith.constant -0.166666672 : f32
    %41 = vector.broadcast %cst_16 : f32 to vector<48x128xf32>
    %42 = arith.addf %41, %40 : vector<48x128xf32>
    %43 = arith.mulf %32, %42 : vector<48x128xf32>
    %cst_17 = arith.constant 1.000000e+00 : f32
    %44 = vector.broadcast %cst_17 : f32 to vector<48x128xf32>
    %45 = arith.addf %44, %43 : vector<48x128xf32>
    %46 = arith.mulf %31, %45 : vector<48x128xf32>
    %47 = vector.shape_cast %46 : vector<48x128xf32> to vector<6x8x128xf32>
    %cst_18 = arith.constant dense<0.000000e+00> : vector<8x128xf32>
    %48 = vector.multi_reduction <add>, %47, %cst_18 [0] : vector<6x8x128xf32> to vector<8x128xf32>
    %c0_19 = arith.constant 0 : index
    %c0_20 = arith.constant 0 : index
    %c0_21 = arith.constant 0 : index
    %49 = vector.load %arg5[%c0_19, %c0_20, %c0_21] : memref<1x8x128xf32, #tpu.memory_space<vmem>>, vector<1x8x128xf32>
    %50 = vector.shape_cast %48 : vector<8x128xf32> to vector<1x8x128xf32>
    %51 = arith.addf %49, %50 : vector<1x8x128xf32>
    %c0_22 = arith.constant 0 : index
    %c0_23 = arith.constant 0 : index
    %c0_24 = arith.constant 0 : index
    %52 = vector.load %arg5[%c0_22, %c0_23, %c0_24] : memref<1x8x128xf32, #tpu.memory_space<vmem>>, vector<1x8x128xf32>
    tpu.vector_store %arg5[%c0_22, %c0_23, %c0_24], %51 {strides = array<i32>} : memref<1x8x128xf32, #tpu.memory_space<vmem>>, vector<1x8x128xf32>,
    return
  }
  func.func @transform_0(%arg0: i32, %arg1: i32) -> (i32, i32) {
    %c1_i32 = arith.constant 1 : i32
    %0 = arith.muli %arg0, %c1_i32 : i32
    %1 = arith.addi %0, %arg1 : i32
    %c0_i32 = arith.constant 0 : i32
    %2 = arith.minsi %1, %c0_i32 : i32
    %c0_i32_0 = arith.constant 0 : i32
    %c0_i32_1 = arith.constant 0 : i32
    return %2, %c0_i32_0 : i32, i32
  }
  func.func @transform_1(%arg0: i32, %arg1: i32) -> (i32, i32) {
    %c1_i32 = arith.constant 1 : i32
    %0 = arith.muli %arg0, %c1_i32 : i32
    %1 = arith.addi %0, %arg1 : i32
    %c0_i32 = arith.constant 0 : i32
    %2 = arith.minsi %1, %c0_i32 : i32
    %c0_i32_0 = arith.constant 0 : i32
    %c0_i32_1 = arith.constant 0 : i32
    return %2, %c0_i32_0 : i32, i32
  }
  func.func @transform_2(%arg0: i32, %arg1: i32) -> (i32, i32) {
    %c0_i32 = arith.constant 0 : i32
    %c0_i32_0 = arith.constant 0 : i32
    %c0_i32_1 = arith.constant 0 : i32
    return %c0_i32, %c0_i32_0 : i32, i32
  }
  func.func @transform_3(%arg0: i32, %arg1: i32) -> (i32, i32, i32) {
    %c0_i32 = arith.constant 0 : i32
    %c0_i32_0 = arith.constant 0 : i32
    %c0_i32_1 = arith.constant 0 : i32
    return %arg0, %c0_i32, %c0_i32_0 : i32, i32, i32
  }
}

</mosaic_0001>

<bundles_post_ra>
// kernel: tpu_custom_call.1
= control target key start
LH: loop header
LB: loop body
LE: loop exit
PB: predicated region body
PF: predicated region fallthrough
CT: control target
= control target key end

     0   :  { %vm159_vm0 = vcmask 1041408   ;;  %vm140_vm1 = vcmask 146432   ;;  %s547_s0 = inlined_call_operand.vmem [shape: f32[48,18], index: 0, kind: input, shape index: {}]   ;;  %s548_s1 = inlined_call_operand.vmem [shape: f32[48,18], index: 1, kind: input, shape index: {}]   ;;  %s549_s2 = inlined_call_operand.vmem [shape: f32[18,128], index: 2, kind: input, shape index: {}]   ;;  %s550_s3 = inlined_call_operand.hbm [shape: f32[1,8,128], index: 3, kind: output, shape index: {}]  }
   0x1   :  { %v139_v0 = vld [vmem:[%s549_s2 + $0x10] sm:$0x3]  ;;  %v138_v1 = vld [vmem:[%s549_s2 + $0x8] sm:$0xff]  ;;  %v137_v2 = vld [vmem:[%s549_s2] sm:$0xff] }
   0x2   :  { %422 = vmatprep.subr.msk.mxu0 %vm159_vm0, %v139_v0  ;;  %437 = vmatprep.subr.msk.mxu1 %vm159_vm0, %v139_v0  ;;  %v101_v3 = vld [vmem:[%s547_s0] sm:$0xff]  ;;  %v103_v5 = vld [vmem:[%s547_s0 + $0x10] sm:$0xff]  ;;  %v102_v7 = vld [vmem:[%s547_s0 + $0x8] sm:$0xff] }
   0x3   :  { %v107_v4 = vld [vmem:[%s548_s1] sm:$0xff]  ;;  %423 = vmatpush3.msk.msra.mxu0 %vm159_vm0, %v139_v0  ;;  %440 = vmatpush3.msk.msra.mxu1 %vm159_vm0, %v139_v0  ;;  %v109_v6 = vld [vmem:[%s548_s1 + $0x10] sm:$0xff]  ;;  %v108_v8 = vld [vmem:[%s548_s1 + $0x8] sm:$0xff] }
   0x4   :  { %424 = vmatprep.subr.mxu0 %v138_v1  ;;  %438 = vmatprep.subr.mxu1 %v138_v1  ;;  %v113_v9 = vadd.f32 %v107_v4, %v101_v3  ;;  %v115_v10 = vadd.f32 %v109_v6, %v103_v5  ;;  %v104_v11 = vld [vmem:[%s547_s0 + $0x18] sm:$0xff]  ;;  %v105_v13 = vld [vmem:[%s547_s0 + $0x20] sm:$0xff]  ;;  %v114_v14 = vadd.f32 %v108_v8, %v102_v7  ;;  %v106_v18 = vld [vmem:[%s547_s0 + $0x28] sm:$0xff] }
   0x5   :  { %v110_v12 = vld [vmem:[%s548_s1 + $0x18] sm:$0xff]  ;;  %425 = vmatpush3.msra.mxu0 %v138_v1  ;;  %441 = vmatpush3.msra.mxu1 %v138_v1  ;;  %v111_v16 = vld [vmem:[%s548_s1 + $0x20] sm:$0xff]  ;;  %v112_v19 = vld [vmem:[%s548_s1 + $0x28] sm:$0xff] }
   0x6   :  { %v116_v15 = vadd.f32 %v110_v12, %v104_v11  ;;  %426 = vmatprep.subr.mxu0 %v137_v2  ;;  %439 = vmatprep.subr.mxu1 %v137_v2  ;;  %v117_v17 = vadd.f32 %v111_v16, %v105_v13 }
   0x7   :  { %8 = vsyncpa [#allocation3], 0  ;;  %427 = vmatpush3.msra.mxu0 %v137_v2  ;;  %442 = vmatpush3.msra.mxu1 %v137_v2  ;;  %v118_v20 = vadd.f32 %v112_v19, %v106_v18  ;;  %s467_s0 = smov [#allocation2]  }
   0x8   :  { %428 = vmatprep.mubr.msk.f32.mxu0 %vm140_vm1, %v113_v9  ;;  %431 = vmatprep.mubr.msk.f32.mxu1 %vm140_vm1, %v115_v10  ;;  %s380_s1 = sshll.u32 %s467_s0, 4  ;;  %s381_s1 = int_to_ptr.vmem [resolvable:$true] %s380_s1 }
   0x9   :  { %429 = vmatmul.mubr.msk.f32.vlgmr.msra.gmra.mxu0 %vm140_vm1, %v114_v14  ;;  %432 = vmatmul.mubr.msk.f32.vlgmr.msra.gmra.mxu1 %vm140_vm1, %v116_v15  ;;  %s445_s14 = scalar_lea.vmem %s381_s1, 128  ;;  %p450_p1 = scmp.lt.s32.totalorder %s381_s1, %s381_s1 }
   0xa   :  { %434 = vmatprep.mubr.msk.f32.mxu1 %vm140_vm1, %v117_v17  ;;  %p446_p0 = scmp.ne.s32.totalorder %s381_s1, %s445_s14  ;;  %p451_p2 = scmp.lt.s32.totalorder %s445_s14, %s445_s14 }
   0xc   :  { %p452_p3 = por %p451_p2, %p450_p1 }
   0xd   :  { %435 = vmatmul.mubr.msk.f32.gmra.mxu1 %vm140_vm1, %v118_v20 }
   0xe   :  { %p453_p4 = pnand %p452_p3, %p446_p0 }
  0xc9   :  { %v430_v21 = vpop.f32.mrf.mxu0  ;;  %v433_v22 = vpop.f32.mrf.mxu1 }
  0xca   :  { %v259_v23 = vmul.f32 0.5, %v430_v21  ;;  %v261_v24 = vmul.f32 0.5, %v433_v22 }
  0xcb   :  { %v229_v25 = vpop.f32.mrf.mxu0  ;;  %v239_v26 = vpop.f32.mrf.mxu1 }
  0xcc   :  { %v265_v27 = vfloor.f32 %v259_v23  ;;  %v267_v28 = vfloor.f32 %v261_v24  ;;  %v258_v29 = vmul.f32 0.5, %v229_v25  ;;  %v260_v30 = vmul.f32 0.5, %v239_v26 }
  0xcd   :  { %v436_v31 = vpop.f32.mrf.mxu1 }
  0xce   :  { %v271_v32 = vmul.f32 2.0, %v265_v27  ;;  %v273_v33 = vmul.f32 2.0, %v267_v28  ;;  %v264_v34 = vfloor.f32 %v258_v29  ;;  %v266_v35 = vfloor.f32 %v260_v30 }
  0xcf   :  { %v263_v36 = vmul.f32 0.5, %v436_v31  ;;  %v249_v37 = vpop.f32.mrf.mxu1 }
  0xd0   :  { %v277_v38 = vsub.f32 %v430_v21, %v271_v32  ;;  %v279_v39 = vsub.f32 %v433_v22, %v273_v33  ;;  %v270_v40 = vmul.f32 2.0, %v264_v34  ;;  %v272_v41 = vmul.f32 2.0, %v266_v35 }
  0xd1   :  { %v269_v42 = vfloor.f32 %v263_v36  ;;  %v262_v43 = vmul.f32 0.5, %v249_v37 }
  0xd2   :  { %v408_v44 = vadd.f32 -1.0, %v277_v38  ;;  %v410_v45 = vadd.f32 -1.0, %v279_v39  ;;  %v276_v46 = vsub.f32 %v229_v25, %v270_v40  ;;  %v278_v47 = vsub.f32 %v239_v26, %v272_v41 }
  0xd3   :  { %v275_v48 = vmul.f32 2.0, %v269_v42  ;;  %v268_v49 = vfloor.f32 %v262_v43 }
  0xd4   :  { %v289_v50 = vand.u32 2147483647, %v408_v44  ;;  %v291_v51 = vand.u32 2147483647, %v410_v45  ;;  %v407_v52 = vadd.f32 -1.0, %v276_v46  ;;  %v409_v53 = vadd.f32 -1.0, %v278_v47 }
  0xd5   :  { %v281_v54 = vsub.f32 %v436_v31, %v275_v48  ;;  %v274_v55 = vmul.f32 2.0, %v268_v49 }
  0xd6   :  { %v295_v56 = vsub.f32 1.0, %v289_v50  ;;  %v297_v57 = vsub.f32 1.0, %v291_v51  ;;  %v288_v58 = vand.u32 2147483647, %v407_v52  ;;  %v290_v59 = vand.u32 2147483647, %v409_v53 }
  0xd7   :  { %v412_v60 = vadd.f32 -1.0, %v281_v54  ;;  %v280_v61 = vsub.f32 %v249_v37, %v274_v55 }
  0xd8   :  { %v301_v62 = vmul.f32 1.5707964, %v295_v56  ;;  %v539_v63 = vmul.f32 1.5707964, %v297_v57  ;;  %v294_v0 = vsub.f32 1.0, %v288_v58  ;;  %v296_v1 = vsub.f32 1.0, %v290_v59 }
  0xd9   :  { %v293_v2 = vand.u32 2147483647, %v412_v60  ;;  %v411_v3 = vadd.f32 -1.0, %v280_v61 }
  0xda   :  { %v307_v4 = vmul.f32 %v301_v62, %v301_v62  ;;  %v309_v5 = vmul.f32 %v539_v63, %v539_v63  ;;  %v300_v6 = vmul.f32 1.5707964, %v294_v0  ;;  %v302_v7 = vmul.f32 1.5707964, %v296_v1 }
  0xdb   :  { %v299_v8 = vsub.f32 1.0, %v293_v2  ;;  %v292_v9 = vand.u32 2147483647, %v411_v3 }
  0xdc   :  { %v313_v10 = vmul.f32 2.7557319e-06, %v307_v4  ;;  %v315_v11 = vmul.f32 2.7557319e-06, %v309_v5  ;;  %v306_v12 = vmul.f32 %v300_v6, %v300_v6  ;;  %v308_v13 = vmul.f32 %v302_v7, %v302_v7 }
  0xdd   :  { %v305_v14 = vmul.f32 1.5707964, %v299_v8  ;;  %v298_v15 = vsub.f32 1.0, %v292_v9 }
  0xde   :  { %v319_v16 = vadd.f32 -0.0001984127, %v313_v10  ;;  %v321_v17 = vadd.f32 -0.0001984127, %v315_v11  ;;  %v312_v18 = vmul.f32 2.7557319e-06, %v306_v12 }
  0xdf   :  { %v314_v19 = vmul.f32 2.7557319e-06, %v308_v13  ;;  %v311_v20 = vmul.f32 %v305_v14, %v305_v14  ;;  %v304_v21 = vmul.f32 1.5707964, %v298_v15 }
  0xe0   :  { %v325_v22 = vmul.f32 %v319_v16, %v307_v4  ;;  %v327_v23 = vmul.f32 %v321_v17, %v309_v5  ;;  %v318_v24 = vadd.f32 -0.0001984127, %v312_v18 }
  0xe1   :  { %v320_v25 = vadd.f32 -0.0001984127, %v314_v19  ;;  %v317_v26 = vmul.f32 2.7557319e-06, %v311_v20  ;;  %v310_v27 = vmul.f32 %v304_v21, %v304_v21 }
  0xe2   :  { %v331_v28 = vadd.f32 0.008333334, %v325_v22  ;;  %v333_v29 = vadd.f32 0.008333334, %v327_v23  ;;  %v324_v30 = vmul.f32 %v318_v24, %v306_v12 }
  0xe3   :  { %v326_v31 = vmul.f32 %v320_v25, %v308_v13  ;;  %v323_v32 = vadd.f32 -0.0001984127, %v317_v26  ;;  %v316_v33 = vmul.f32 2.7557319e-06, %v310_v27 }
  0xe4   :  { %v337_v34 = vmul.f32 %v331_v28, %v307_v4  ;;  %v339_v35 = vmul.f32 %v333_v29, %v309_v5  ;;  %v330_v36 = vadd.f32 0.008333334, %v324_v30 }
  0xe5   :  { %v332_v37 = vadd.f32 0.008333334, %v326_v31  ;;  %v329_v38 = vmul.f32 %v323_v32, %v311_v20  ;;  %v322_v39 = vadd.f32 -0.0001984127, %v316_v33 }
  0xe6   :  { %v343_v40 = vadd.f32 -0.16666667, %v337_v34  ;;  %v345_v41 = vadd.f32 -0.16666667, %v339_v35  ;;  %v336_v42 = vmul.f32 %v330_v36, %v306_v12 }
  0xe7   :  { %v338_v43 = vmul.f32 %v332_v37, %v308_v13  ;;  %v335_v44 = vadd.f32 0.008333334, %v329_v38  ;;  %v328_v45 = vmul.f32 %v322_v39, %v310_v27 }
  0xe8   :  { %v349_v46 = vmul.f32 %v343_v40, %v307_v4  ;;  %v342_v47 = vadd.f32 -0.16666667, %v336_v42  ;;  %v351_v52 = vmul.f32 %v345_v41, %v309_v5 }
  0xe9   :  { %v344_v48 = vadd.f32 -0.16666667, %v338_v43  ;;  %v341_v49 = vmul.f32 %v335_v44, %v311_v20  ;;  %v334_v50 = vadd.f32 0.008333334, %v328_v45 }
  0xea   :  { %v355_v51 = vadd.f32 1.0, %v349_v46  ;;  %v348_v53 = vmul.f32 %v342_v47, %v306_v12  ;;  %v357_v61 = vadd.f32 1.0, %v351_v52 }
  0xeb   :  { %v350_v54 = vmul.f32 %v344_v48, %v308_v13  ;;  %v347_v55 = vadd.f32 -0.16666667, %v341_v49  ;;  %v340_v56 = vmul.f32 %v334_v50, %v310_v27 }
  0xec   :  { %v354_v57 = vadd.f32 1.0, %v348_v53  ;;  %v361_v60 = vmul.f32 %v355_v51, %v301_v62  ;;  %v363_v9 = vmul.f32 %v357_v61, %v539_v63 }
  0xed   :  { %v356_v58 = vadd.f32 1.0, %v350_v54  ;;  %v346_v59 = vadd.f32 -0.16666667, %v340_v56  ;;  %v353_v1 = vmul.f32 %v347_v55, %v311_v20 }
  0xee   :  { %v360_v0 = vmul.f32 %v354_v57, %v300_v6 }
  0xef   :  { %v352_v2 = vmul.f32 %v346_v59, %v310_v27  ;;  %v362_v4 = vmul.f32 %v356_v58, %v302_v7  ;;  %v359_v11 = vadd.f32 1.0, %v353_v1 }
  0xf0   :  { %v366_v3 = vadd.f32 %v361_v60, %v360_v0 }
  0xf1   :  { %v358_v8 = vadd.f32 1.0, %v352_v2  ;;  %v365_v13 = vmul.f32 %v359_v11, %v305_v14 }
  0xf2   :  { %v367_v10 = vadd.f32 %v366_v3, %v362_v4 }
  0xf3   :  { %v364_v5 = vmul.f32 %v358_v8, %v304_v21 }
  0xf4   :  { %v368_v12 = vadd.f32 %v367_v10, %v363_v9 }
  0xf6   :  { %v369_v15 = vadd.f32 %v368_v12, %v364_v5 }
  0xf8   :  { %v370_v16 = vadd.f32 %v369_v15, %v365_v13 }
  0xfa   :  { %373 = vst [vmem:[#allocation2] sm:$0xff] %v370_v16 }
  0xfb   :  { %456 = shalt.err (!%p453_p4)
}
  0xfc   :  { %383 = dma.vmem_to_hbm [thread:$0]  %s381_s1, 128, %s550_s3, [#allocation3]  }
  0xfd   :  { %465 = dma.done.wait [#allocation3], 128  }
  0xfe   :  { %466 = vsyncadd [#allocation3], 4294967168 }
  0xff   :  { %387 = vsyncpa [#allocation3], 1 }

</bundles_post_ra>
